<compile_context>
chip_gen: v6e
topology: v6e:2x2x1
jax: 0.10.0
libtpu: 0.0.40
codegen_flags: <defaults>
</compile_context>

<pallas_src>
import functools

import jax
import jax.numpy as jnp
from jax import lax
from jax.experimental import pallas as pl
from jax.experimental.pallas import tpu as pltpu

EPS = 1e-5  # BATCH_NORM_EPSILON


def _bn_act_kernel(x_ref, g_ref, b_ref, o_ref, *, activation, inv_n):
    """Training-mode BatchNorm2d + activation on one channel block.

    x_ref: (N, cb, HW)   g_ref/b_ref: (1, cb, 1) f32   o_ref: (N, cb, HW)
    """
    x = x_ref[...]                                            # native dtype

    # Single-pass per-channel statistics, accumulated in f32.
    s1 = jnp.sum(x, axis=(0, 2), keepdims=True, dtype=jnp.float32)        # sum(x)
    s2 = jnp.sum(jnp.square(x.astype(jnp.float32)), axis=(0, 2),
                 keepdims=True)                                           # sum(x^2)
    mean = s1 * inv_n                                         # (1, cb, 1)
    # E[x^2] - mean^2: slightly less cancellation-robust than the two-pass
    # form, but f32 accumulation keeps it well within BN tolerances.
    var = jnp.maximum(s2 * inv_n - jnp.square(mean), 0.0)

    scale = g_ref[...] * lax.rsqrt(var + EPS)                 # (1, cb, 1)
    shift = b_ref[...] - mean * scale

    y = x.astype(jnp.float32) * scale + shift
    if activation == "relu":
        y = jnp.maximum(y, 0.0)
    elif activation == "hardswish":                           # PyTorch Hardswish
        y = y * jnp.clip(y + 3.0, 0.0, 6.0) * (1.0 / 6.0)
    o_ref[...] = y.astype(o_ref.dtype)


def _pick_channel_block(C, N, HW, dtype_bytes):
    """Largest dtype-aligned divisor of C with block <= ~2 MiB, then shrink
    toward >= 8 grid steps so the input/output DMA pipeline overlaps."""
    if dtype_bytes >= 4:
        m = 8
    elif dtype_bytes == 2:
        m = 16
    else:
        m = 32
    if C % m != 0:
        return C                      # full-extent block is always layout-legal
    per_channel = N * HW * dtype_bytes
    budget = 2 << 20                  # ~2 MiB x-block -> ~8 MiB double-buffered
    cands = [cb for cb in range(m, C + 1, m) if C % cb == 0]
    fitting = [cb for cb in cands if cb * per_channel <= budget]
    cb = max(fitting) if fitting else m
    # Prefer >= 8 grid steps (>= 4 per TC on v7x megacore) when C allows.
    while C // cb < 8 and cb > m:
        smaller = [c for c in cands if c < cb]
        if not smaller:
            break
        cb = max(smaller)
    return cb


def bn_relu_pallas(x, gamma, beta, *, activation="relu"):
    """BNReLU forward.  x: (N, C, H, W) NCHW; gamma/beta: (C,).

    activation: "relu" | "hardswish" | None (nonlinearity=False path).
    """
    N, C, H, W = x.shape
    HW = H * W
    dtype_bytes = jnp.dtype(x.dtype).itemsize

    cb = _pick_channel_block(C, N, HW, dtype_bytes)
    grid = (C // cb,)

    x3 = x.reshape(N, C, HW)                       # free reshape, no transpose
    g3 = gamma.reshape(1, C, 1).astype(jnp.float32)
    b3 = beta.reshape(1, C, 1).astype(jnp.float32)

    # Raise the scoped-VMEM limit only when the double-buffered footprint
    # would exceed the conservative 16 MiB default (v5e); cap at 64 MiB (v7x).
    blk_bytes = N * cb * HW * dtype_bytes
    est_vmem = 2 * 2 * blk_bytes + (1 << 20)       # 2 bufs x (in + out) + slack
    cp_kwargs = dict(dimension_semantics=("parallel",))
    if est_vmem > (16 << 20):
        cp_kwargs["vmem_limit_bytes"] = int(min(max(est_vmem, 32 << 20), 64 << 20))

    kern = functools.partial(_bn_act_kernel, activation=activation,
                             inv_n=1.0 / float(N * HW))
    out = pl.pallas_call(
        kern,
        grid=grid,
        in_specs=[
            pl.BlockSpec((N, cb, HW), lambda i: (0, i, 0)),
            pl.BlockSpec((1, cb, 1), lambda i: (0, i, 0)),
            pl.BlockSpec((1, cb, 1), lambda i: (0, i, 0)),
        ],
        out_specs=pl.BlockSpec((N, cb, HW), lambda i: (0, i, 0)),
        out_shape=jax.ShapeDtypeStruct((N, C, HW), x.dtype),
        compiler_params=pltpu.CompilerParams(**cp_kwargs),
    )(x3, g3, b3)
    return out.reshape(N, C, H, W)


# -----------------------------------------------------------------------------
# Pure-JAX reference (literal translation of the PyTorch forward, training BN)
# -----------------------------------------------------------------------------
def reference_bn_relu(x, gamma, beta, *, activation="relu"):
    mean = jnp.mean(x, axis=(0, 2, 3), keepdims=True)
    var = jnp.mean((x - mean) ** 2, axis=(0, 2, 3), keepdims=True)
    y = (x - mean) * lax.rsqrt(var + EPS)
    y = y * gamma[None, :, None, None] + beta[None, :, None, None]
    if activation == "relu":
        y = jnp.maximum(y, 0.0)
    elif activation == "hardswish":
        y = y * jnp.clip(y + 3.0, 0.0, 6.0) / 6.0
    return y


# -----------------------------------------------------------------------------
if __name__ == "__main__":
    N, C, H, W = 2, 32, 16, 16
    key = jax.random.PRNGKey(0)
    kx, kg, kb = jax.random.split(key, 3)
    x = jax.random.normal(kx, (N, C, H, W), jnp.float32)

    # Case 1: PyTorch default init (gamma=1, beta=0), nonlinearity=True (ReLU).
    g1 = jnp.ones((C,), jnp.float32)
    b1 = jnp.zeros((C,), jnp.float32)
    out1 = jax.block_until_ready(bn_relu_pallas(x, g1, b1, activation="relu"))
    ref1 = reference_bn_relu(x, g1, b1, activation="relu")

    # Case 2: arbitrary learned gamma/beta, nonlinearity=False path.
    g2 = 1.0 + 0.3 * jax.random.normal(kg, (C,), jnp.float32)
    b2 = 0.2 * jax.random.normal(kb, (C,), jnp.float32)
    out2 = jax.block_until_ready(bn_relu_pallas(x, g2, b2, activation=None))
    ref2 = reference_bn_relu(x, g2, b2, activation=None)

    assert out1.shape == (N, C, H, W), out1.shape
    ok1 = bool(jnp.allclose(out1, ref1, rtol=1e-4, atol=1e-4))
    ok2 = bool(jnp.allclose(out2, ref2, rtol=1e-4, atol=1e-4))
    if not (ok1 and ok2):
        err = max(float(jnp.max(jnp.abs(out1 - ref1))),
                  float(jnp.max(jnp.abs(out2 - ref2))))
        raise SystemExit(f"mismatch: max abs err = {err}")
    print("KERNEL_OK")
</pallas_src>

<mosaic_0001>
module attributes {stable_mosaic.version = 11 : i64} {
  func.func @_bn_act_kernel(%arg0: i32, %arg1: memref<2x8x256xf32, #tpu.memory_space<vmem>>, %arg2: memref<1x8x1xf32, #tpu.memory_space<vmem>>, %arg3: memref<1x8x1xf32, #tpu.memory_space<vmem>>, %arg4: memref<2x8x256xf32, #tpu.memory_space<vmem>>) attributes {dimension_semantics = [#tpu.dimension_semantics<parallel>], iteration_bounds = array<i64: 4>, scalar_prefetch = 0 : i64, scratch_operands = 0 : i64, tpu.core_type = #tpu.core_type<tc>, window_params = [{transform_indices = @transform_0, window_bounds = array<i64: 2, 8, 256>}, {transform_indices = @transform_1, window_bounds = array<i64: 1, 8, 1>}, {transform_indices = @transform_2, window_bounds = array<i64: 1, 8, 1>}, {transform_indices = @transform_3, window_bounds = array<i64: 2, 8, 256>}]} {
    %c0 = arith.constant 0 : index
    %c0_0 = arith.constant 0 : index
    %c0_1 = arith.constant 0 : index
    %0 = vector.load %arg1[%c0, %c0_0, %c0_1] : memref<2x8x256xf32, #tpu.memory_space<vmem>>, vector<2x8x256xf32>
    %cst = arith.constant dense<0.000000e+00> : vector<8xf32>
    %1 = vector.multi_reduction <add>, %0, %cst [0, 2] : vector<2x8x256xf32> to vector<8xf32>
    %2 = vector.shape_cast %1 : vector<8xf32> to vector<1x8x1xf32>
    %3 = arith.mulf %0, %0 : vector<2x8x256xf32>
    %cst_2 = arith.constant dense<0.000000e+00> : vector<8xf32>
    %4 = vector.multi_reduction <add>, %3, %cst_2 [0, 2] : vector<2x8x256xf32> to vector<8xf32>
    %5 = vector.shape_cast %4 : vector<8xf32> to vector<1x8x1xf32>
    %cst_3 = arith.constant 0.001953125 : f32
    %6 = vector.broadcast %cst_3 : f32 to vector<1x8x1xf32>
    %7 = arith.mulf %2, %6 : vector<1x8x1xf32>
    %cst_4 = arith.constant 0.001953125 : f32
    %8 = vector.broadcast %cst_4 : f32 to vector<1x8x1xf32>
    %9 = arith.mulf %5, %8 : vector<1x8x1xf32>
    %10 = arith.mulf %7, %7 : vector<1x8x1xf32>
    %11 = arith.subf %9, %10 : vector<1x8x1xf32>
    %cst_5 = arith.constant 0.000000e+00 : f32
    %12 = vector.broadcast %cst_5 : f32 to vector<1x8x1xf32>
    %13 = arith.maximumf %11, %12 : vector<1x8x1xf32>
    %c0_6 = arith.constant 0 : index
    %c0_7 = arith.constant 0 : index
    %c0_8 = arith.constant 0 : index
    %14 = vector.load %arg2[%c0_6, %c0_7, %c0_8] : memref<1x8x1xf32, #tpu.memory_space<vmem>>, vector<1x8x1xf32>
    %cst_9 = arith.constant 9.99999974E-6 : f32
    %15 = vector.broadcast %cst_9 : f32 to vector<1x8x1xf32>
    %16 = arith.addf %13, %15 : vector<1x8x1xf32>
    %17 = math.rsqrt %16 : vector<1x8x1xf32>
    %18 = arith.mulf %14, %17 : vector<1x8x1xf32>
    %c0_10 = arith.constant 0 : index
    %c0_11 = arith.constant 0 : index
    %c0_12 = arith.constant 0 : index
    %19 = vector.load %arg3[%c0_10, %c0_11, %c0_12] : memref<1x8x1xf32, #tpu.memory_space<vmem>>, vector<1x8x1xf32>
    %20 = arith.mulf %7, %18 : vector<1x8x1xf32>
    %21 = arith.subf %19, %20 : vector<1x8x1xf32>
    %22 = vector.broadcast %18 : vector<1x8x1xf32> to vector<2x8x256xf32>
    %23 = arith.mulf %0, %22 : vector<2x8x256xf32>
    %24 = vector.broadcast %21 : vector<1x8x1xf32> to vector<2x8x256xf32>
    %25 = arith.addf %23, %24 : vector<2x8x256xf32>
    %cst_13 = arith.constant 0.000000e+00 : f32
    %26 = vector.broadcast %cst_13 : f32 to vector<2x8x256xf32>
    %27 = arith.maximumf %25, %26 : vector<2x8x256xf32>
    %c0_14 = arith.constant 0 : index
    %c0_15 = arith.constant 0 : index
    %c0_16 = arith.constant 0 : index
    %28 = vector.load %arg4[%c0_14, %c0_15, %c0_16] : memref<2x8x256xf32, #tpu.memory_space<vmem>>, vector<2x8x256xf32>
    tpu.vector_store %arg4[%c0_14, %c0_15, %c0_16], %27 {strides = array<i32>} : memref<2x8x256xf32, #tpu.memory_space<vmem>>, vector<2x8x256xf32>,
    return
  }
  func.func @transform_0(%arg0: i32) -> (i32, i32, i32) {
    %c0_i32 = arith.constant 0 : i32
    %c0_i32_0 = arith.constant 0 : i32
    %c0_i32_1 = arith.constant 0 : i32
    return %c0_i32, %arg0, %c0_i32_0 : i32, i32, i32
  }
  func.func @transform_1(%arg0: i32) -> (i32, i32, i32) {
    %c0_i32 = arith.constant 0 : i32
    %c0_i32_0 = arith.constant 0 : i32
    %c0_i32_1 = arith.constant 0 : i32
    return %c0_i32, %arg0, %c0_i32_0 : i32, i32, i32
  }
  func.func @transform_2(%arg0: i32) -> (i32, i32, i32) {
    %c0_i32 = arith.constant 0 : i32
    %c0_i32_0 = arith.constant 0 : i32
    %c0_i32_1 = arith.constant 0 : i32
    return %c0_i32, %arg0, %c0_i32_0 : i32, i32, i32
  }
  func.func @transform_3(%arg0: i32) -> (i32, i32, i32) {
    %c0_i32 = arith.constant 0 : i32
    %c0_i32_0 = arith.constant 0 : i32
    %c0_i32_1 = arith.constant 0 : i32
    return %c0_i32, %arg0, %c0_i32_0 : i32, i32, i32
  }
}

</mosaic_0001>

<bundles_post_ra>
// kernel: tpu_custom_call.1
= control target key start
LH: loop header
LB: loop body
LE: loop exit
PB: predicated region body
PF: predicated region fallthrough
CT: control target
= control target key end

     0   :  { %8 = vsyncpa [#allocation3], 0  ;;  %s754_s0 = inlined_call_operand.hbm [shape: f32[2,32,256], index: 0, kind: input, shape index: {}]   ;;  %s755_s1 = inlined_call_operand.vmem [shape: f32[1,32,1], index: 1, kind: input, shape index: {}]   ;;  %s756_s2 = inlined_call_operand.vmem [shape: f32[1,32,1], index: 2, kind: input, shape index: {}]   ;;  %s757_s3 = inlined_call_operand.hbm [shape: f32[2,32,256], index: 3, kind: output, shape index: {}]  }
   0x1   :  { %10 = vsyncpa [#allocation3 + $0x1], 0 }
   0x2   :  { %11 = vsyncpa [#allocation4], 0 }
   0x3   :  { %13 = vsyncpa [#allocation4 + $0x1], 0  ;;  %s588_s12 = smov 0   ;;  %s590_s13 = smov 0  }
   0x4   :  { %s592_s14 = smov 0   ;;  %s594_s15 = smov 0  }
   0x5 LB: > { %s609_s16 = sadd.s32 4294967295, %s557_s15   ;;  %s390_s17 = sadd.s32 4294967294, %s557_s15   ;;  %s557_s15 = sphi %s594_s15, %s772_s15   ;;  %s553_s14 = sphi %s592_s14, %s771_s14   ;;  %s549_s13 = sphi %s590_s13, %s770_s13   ;;  %s545_s12 = sphi %s588_s12, %s769_s12  }
   0x6   : > { %s613_s18 = sadd.s32 1, %s557_s15   ;;  %s26_s19 = sadd.s32 1, %s553_s14 }
   0x7   : > { %s23_s20 = ssub.s32 %s557_s15, %s613_s18  ;;  %p33_p0 = scmp.ne.s32.totalorder %s553_s14, %s549_s13 }
   0x8   : > { %p24_p1 = scmp.eq.s32.totalorder %s23_s20, 0  ;;  %p34_p2 = scmp.eq.s32.totalorder %s557_s15, 0 }
   0x9   : > { %p39_p3 = scmp.ne.s32.totalorder %s549_s13, %s545_s12  ;;  %p40_p4 = scmp.eq.s32.totalorder %s609_s16, 0 }
   0xa   : > { %s625_s21 = scalar_select %p24_p1, %s553_s14, %s26_s19  }
   0xb   : > { %p627_p5 = por %p34_p2, %p33_p0  ;;  %p631_p6 = por %p40_p4, %p39_p3 }
   0xc   : > { %p115_p7 = scmp.eq.s32.totalorder %s609_s16, 3  ;;  %p121_p8 = scmp.eq.s32.totalorder %s390_s17, 3 }
   0xd   : > { %s761_s23 = scalar_select %p631_p6, 1, 0 }
   0xe   : > { %p420_p9 = scmp.lt.s32.totalorder %s557_s15, 4  ;;  %p637_p10 = por %p115_p7, %p33_p0 }
   0xf   : > { %p641_p11 = por %p121_p8, %p39_p3  ;;  %s141_s26 = sand.u32 1, %s553_s14  }
  0x10   : > { %s762_s24 = scalar_select %p637_p10, 1, 0 }
  0x11   : > { %s763_s25 = scalar_select %p641_p11, 1, 0 }
  0x12   : > { %s406_s27 = sshll.u32 %s557_s15, 8  ;;  %s393_s28 = sshll.u32 %s141_s26, 5 }
  0x13   : > { %s650_s4 = scalar_lea.hbm %s754_s0, %s406_s27  ;;  %s145_s5 = scalar_lea.vmem [#allocation2], %s393_s28 }
  0x14   : > { %s152_s6 = sshll.u32 %s145_s5, 4  ;;  %p654_p12 = pnand %p420_p9, %p627_p5  ;;  %s658_s6 = int_to_ptr.vmem [resolvable:$true] %s152_s6 }
  0x15   : > { %s661_s8 = scalar_lea.sflag [#allocation3], %s141_s26  ;;  %s465_s9 = scalar_lea.hbm %s650_s4, 512 }
  0x16   : > { %p466_p0 = scmp.ne.s32.totalorder %s650_s4, %s465_s9  ;;  %p467_p1 = pneg %p654_p12 }
  0x17   : > { %s470_s17 = scalar_lea.hbm %s754_s0, 2048  ;;  %p471_p4 = scmp.lt.s32.totalorder %s650_s4, %s754_s0 }
  0x18   : > { %p468_p2 = pnand %p467_p1, %p466_p0  ;;  %p472_p5 = scmp.lt.s32.totalorder %s470_s17, %s465_s9 }
  0x1a   : > { %p469_p3 = pneg %p468_p2  ;;  %p473_p7 = por %p472_p5, %p471_p4 }
  0x1c   : > { %p474_p8 = pnand %p473_p7, %p469_p3 }
  0x1e   : > { %477 = shalt.err (!%p474_p8)
}
  0x1f   : > { %s478_s22 = scalar_lea.vmem %s658_s6, 512  ;;  %s559_s26 = smov [#allocation2]  }
  0x20   : > { %p479_p9 = scmp.ne.s32.totalorder %s658_s6, %s478_s22  ;;  %s483_s27 = sshll.u32 %s559_s26, 4  ;;  %s484_s27 = int_to_ptr.vmem [resolvable:$false] %s483_s27 }
  0x21   : > { %s485_s28 = scalar_lea.vmem %s484_s27, 1024  ;;  %p486_p2 = scmp.lt.s32.totalorder %s658_s6, %s484_s27 }
  0x22   : > { %p481_p13 = pnand %p479_p9, %p467_p1  ;;  %p487_p11 = scmp.lt.s32.totalorder %s485_s28, %s478_s22 }
  0x24   : > { %p482_p0 = pneg %p481_p13  ;;  %p488_p10 = por %p487_p11, %p486_p2 }
  0x26   : > { %p489_p6 = pnand %p488_p10, %p482_p0 }
  0x28   : > { %492 = shalt.err (!%p489_p6)
}
  0x29   : > { %s560_s29 = smov 1024   ;;  %s561_s30 = smov 256  }
  0x2a   : > { %s562_s5 = smov 16   ;;  %p174_p13 = scmp.lt.s32.totalorder %s557_s15, 5 }
  0x2b   : > { %415 = dma.hbm_to_vmem [thread:$0]  (!%p654_p12), %s650_s4, 512, %s658_s6, %s661_s8, %s560_s29, %s561_s30, %s562_s5  }
  0x2c   : > { %p765_p1 = scmp.ge.s32.totalorder %s557_s15, 1 }
  0x2e   : > { %p175_p3 = pnand %p765_p1, %p174_p13 }
  0x2f   : > { %s686_s9 = sand.u32 (!%p175_p3), 1, %s549_s13   ;;  %p766_p6 = scmp.ne.s32.totalorder (!%p175_p3), %s761_s23, 0 }
  0x30   : > { %178 = sbr.rel (%p175_p3) target bundleno = 375 (0x177), region = 32  ;;  %s397_s10 = sshll.u32 (!%p175_p3), %s686_s9, 5 }
  0x31   : > { %s181_s11 = scalar_lea.sflag (!%p175_p3), [#allocation3], %s686_s9  ;;  %s184_s17 = scalar_lea.vmem (!%p175_p3), [#allocation2], %s397_s10 }
  0x35   : > { %536 = dma.done.wait (%p766_p6), %s181_s11, 512  }
  0x36   : > { %538 = vsyncadd (%p766_p6), %s181_s11, 4294966784  ;;  %v223_v0 = vld [vmem:[%s184_s17] sm:$0xff]  ;;  %v224_v1 = vld [vmem:[%s184_s17 + $0x8] sm:$0xff]  ;;  %v563_v14 = vmov 0   ;;  %p215_p10 = scmp.lt.s32.totalorder %s609_s16, 3  ;;  %s214_s26 = scalar_lea.vmem [#allocation5], %s397_s10 }
  0x37   : > { %v225_v2 = vld [vmem:[%s184_s17 + $0x10] sm:$0xff]  ;;  %v227_v3 = vadd.f32 %v224_v1, %v223_v0  ;;  %v232_v4 = vmul.f32 %v223_v0, %v223_v0  ;;  %v233_v5 = vmul.f32 %v224_v1, %v224_v1  ;;  %v226_v7 = vld [vmem:[%s184_s17 + $0x18] sm:$0xff]  ;;  %461 = vset.pattern.permute.xlu1 %v563_v14  ;;  %462 = vset.pattern.permute.xlu0 %v563_v14  ;;  %s293_s27 = sshll.u32 %s214_s26, 4  ;;  %s407_s28 = sshll.u32 %s609_s16, 8  ;;  %s707_s27 = int_to_ptr.vmem [resolvable:$true] %s293_s27 }
  0x38   : > { %v234_v6 = vmul.f32 %v225_v2, %v225_v2  ;;  %v235_v9 = vmul.f32 %v226_v7, %v226_v7  ;;  %s216_s23 = scalar_select %p215_p10, %s609_s16, 3 }
  0x39   : > { %v228_v8 = vadd.f32 %v227_v3, %v225_v2  ;;  %v236_v10 = vadd.f32 %v233_v5, %v232_v4  ;;  %s712_s5 = scalar_lea.hbm %s757_s3, %s407_s28  ;;  %s280_s16 = scalar_lea.sflag [#allocation4], %s686_s9 }
  0x3a   : > { %s399_s4 = sshll.u32 %s216_s23, 3  ;;  %s493_s10 = scalar_lea.vmem %s707_s27, 512 }
  0x3b   : > { %v229_v11 = vadd.f32 %v228_v8, %v226_v7  ;;  %v237_v12 = vadd.f32 %v236_v10, %v234_v6  ;;  %s218_s8 = scalar_lea.vmem %s755_s1, %s399_s4  ;;  %s222_s22 = scalar_lea.vmem %s756_s2, %s399_s4 }
  0x3c   : > { %v246_v23 = vld [vmem:[%s218_s8] sm:$0xff]  ;;  %p494_p11 = scmp.ne.s32.totalorder %s707_s27, %s493_s10  ;;  %p767_p12 = scmp.ne.s32.totalorder %s762_s24, 0 }
  0x3d   : > { %230 = vadd.xlane.f32.xlu0 %v229_v11  ;;  %v238_v13 = vadd.f32 %v237_v12, %v235_v9  ;;  %v250_v26 = vld [vmem:[%s222_s22] sm:$0xff]  ;;  %s564_s11 = smov [#allocation5]  }
  0x3e   : > { %p495_p4 = pnand %p494_p11, %p767_p12  ;;  %s497_s17 = sshll.u32 %s564_s11, 4  ;;  %s498_s17 = int_to_ptr.vmem [resolvable:$false] %s497_s17 }
  0x3f   : > { %s499_s23 = scalar_lea.vmem %s498_s17, 1024  ;;  %p500_p7 = scmp.lt.s32.totalorder %s707_s27, %s498_s17 }
  0x40   : > { %p496_p5 = pneg %p495_p4  ;;  %p501_p8 = scmp.lt.s32.totalorder %s499_s23, %s493_s10 }
  0x41   : > { %239 = vadd.xlane.f32.xlu0 %v238_v13 }
  0x42   : > { %p502_p9 = por %p501_p8, %p500_p7 }
  0x44   : > { %p503_p0 = pnand %p502_p9, %p496_p5 }
  0xc6   : > { %v231_v15 = vpop.xlane.xlu0 %230 }
  0xc7   : > { %v241_v16 = vmul.f32 0.001953125, %v231_v15 }
  0xc9   : > { %v243_v18 = vmul.f32 %v241_v16, %v241_v16 }
  0xca   : > { %v240_v17 = vpop.xlane.xlu0 %239 }
  0xcb   : > { %v242_v19 = vmul.f32 0.001953125, %v240_v17 }
  0xcd   : > { %v244_v20 = vsub.f32 %v242_v19, %v243_v18 }
  0xcf   : > { %v245_v21 = vmax.f32 %v244_v20, 0.0 }
  0xd1   : > { %v247_v22 = vadd.f32 1e-05, %v245_v21 }
  0xd3   : > { %463 = vrsqrt.f32 %v247_v22 }
  0xe0   : > { %v464_v24 = vpop.eup %463 }
  0xe1   : > { %v249_v25 = vmul.f32 %v464_v24, %v246_v23 }
  0xe3   : > { %255 = vperm.xlu1 %461, %v249_v25   ;;  %v251_v27 = vmul.f32 %v249_v25, %v241_v16 }
  0xe5   : > { %v252_v28 = vsub.f32 %v250_v26, %v251_v27 }
  0xe7   : > { %264 = vperm.xlu1 %461, %v252_v28  }
 0x15e   : > { %v256_v29 = vpop.permute.xlu1 %255 }
 0x15f   : > { %v258_v30 = vmul.f32 %v256_v29, %v223_v0  ;;  %v259_v31 = vmul.f32 %v256_v29, %v224_v1  ;;  %v260_v32 = vmul.f32 %v256_v29, %v225_v2  ;;  %v261_v33 = vmul.f32 %v256_v29, %v226_v7 }
 0x162   : > { %v265_v34 = vpop.permute.xlu1 %264 }
 0x163   : > { %v267_v35 = vadd.f32 %v265_v34, %v258_v30  ;;  %v268_v36 = vadd.f32 %v265_v34, %v259_v31  ;;  %v269_v37 = vadd.f32 %v265_v34, %v260_v32  ;;  %v270_v38 = vadd.f32 %v265_v34, %v261_v33 }
 0x165   : > { %v271_v39 = vmax.f32 %v267_v35, 0.0  ;;  %v272_v40 = vmax.f32 %v268_v36, 0.0  ;;  %v273_v41 = vmax.f32 %v269_v37, 0.0  ;;  %v274_v42 = vmax.f32 %v270_v38, 0.0 }
 0x167   : > { %275 = vst [vmem:[%s214_s26] sm:$0xff] %v271_v39  ;;  %276 = vst [vmem:[%s214_s26 + $0x8] sm:$0xff] %v272_v40 }
 0x168   : > { %277 = vst [vmem:[%s214_s26 + $0x10] sm:$0xff] %v273_v41  ;;  %278 = vst [vmem:[%s214_s26 + $0x18] sm:$0xff] %v274_v42 }
 0x169   : > { %506 = shalt.err (!%p503_p0)
}
 0x16a   : > { %s507_s4 = scalar_lea.hbm %s712_s5, 512  ;;  %s511_s8 = scalar_lea.hbm %s757_s3, 2048 }
 0x16b   : > { %p508_p2 = scmp.ne.s32.totalorder %s712_s5, %s507_s4  ;;  %p512_p3 = scmp.lt.s32.totalorder %s712_s5, %s757_s3 }
 0x16c   : > { %p513_p6 = scmp.lt.s32.totalorder %s511_s8, %s507_s4 }
 0x16d   : > { %p509_p13 = pnand %p508_p2, %p767_p12 }
 0x16e   : > { %p514_p10 = por %p513_p6, %p512_p3 }
 0x16f   : > { %p510_p1 = pneg %p509_p13 }
 0x171   : > { %p515_p11 = pnand %p514_p10, %p510_p1 }
 0x173   : > { %518 = shalt.err (!%p515_p11)
}
 0x174   : > { %s565_s22 = smov 256   ;;  %s566_s26 = smov 1024  }
 0x175   : > { %s567_s28 = smov 16  }
 0x176   : > { %410 = dma.vmem_to_hbm [thread:$0]  (%p767_p12), %s707_s27, 512, %s712_s5, %s280_s16, %s565_s22, %s566_s26, %s567_s28  }
 0x177 PF: > { %p421_p4 = scmp.ge.s32.totalorder %s557_s15, 2  ;;  %s308_s29 = sand.u32 1, %s545_s12  }
 0x178   : > { %p768_p5 = scmp.ne.s32.totalorder %s763_s25, 0  ;;  %s309_s30 = scalar_lea.sflag [#allocation4], %s308_s29 }
 0x17a   : > { %p417_p7 = pnand %p421_p4, %p768_p5 }
 0x17c   : > { %p418_p8 = pneg %p417_p7 }
 0x17e   : > { %540 = dma.done.wait (%p418_p8), %s309_s30, 512  }
 0x17f   : > { %542 = vsyncadd (%p418_p8), %s309_s30, 4294966784  ;;  %p16_p9 = scmp.ge.s32.totalorder %s613_s18, 6   ;;  %s769_s12 = smov %s549_s13 }
 0x180   : > { %s770_s13 = smov %s553_s14  ;;  %s771_s14 = smov %s625_s21 }
 0x181   : > { %s772_s15 = smov %s613_s18  ;;  %18 = sbr.rel (!%p16_p9) target bundleno = 5 (0x5), region = 83 }
 0x186   :  { %314 = vsyncpa [#allocation3], 1 }
 0x187   :  { %316 = vsyncpa [#allocation3 + $0x1], 1 }
 0x188   :  { %317 = vsyncpa [#allocation4], 1 }
 0x189   :  { %319 = vsyncpa [#allocation4 + $0x1], 1 }

</bundles_post_ra>
